<compile_context>
chip_gen: v5e
topology: v5e:2x2
jax: 0.10.0
libtpu: 0.0.40
codegen_flags: <defaults>
</compile_context>

<pallas_src>
import itertools
import numpy as np

import jax
import jax.numpy as jnp
from jax import lax
from jax.experimental import pallas as pl
from jax.experimental.pallas import tpu as pltpu


def _foldingnet_decoder_kernel(g0_ref, code0_ref, code1_ref,
                               w1_ref, b1_ref, wf_ref,
                               v1_ref, c1_ref, v2t_ref, c2t_ref,
                               o_ref):
    # fold 0, layer 0: relu(grid @ w0g + b0 + code @ w0c) -- both matmuls were
    # hoisted to the wrapper, only a (1,H)->(N,H) broadcast add + ReLU remain.
    h = jnp.maximum(g0_ref[...] + code0_ref[...], 0.0)                   # (N, H)

    # fold 0, layer 1
    h = jnp.maximum(
        jnp.dot(h, w1_ref[...], preferred_element_type=jnp.float32) + b1_ref[...],
        0.0)                                                             # (N, H)

    # fold 0 layer 2 fused with fold 1 layer 0:
    #   relu((h @ w2 + b2) @ v0g + code @ v0c + c0)
    # = relu(h @ (w2 @ v0g) + (b2 @ v0g + code @ v0c + c0))
    h = jnp.maximum(
        jnp.dot(h, wf_ref[...], preferred_element_type=jnp.float32) + code1_ref[...],
        0.0)                                                             # (N, H)

    # fold 1, layer 1
    h = jnp.maximum(
        jnp.dot(h, v1_ref[...], preferred_element_type=jnp.float32) + c1_ref[...],
        0.0)                                                             # (N, H)

    # fold 1, layer 2 (H -> 3), emitted transposed so the store is lane-dense:
    # (3,H) contracted with (N,H) over H -> (3, N); N=128 fills the lanes.
    out_t = lax.dot_general(
        v2t_ref[...], h,
        dimension_numbers=(((1,), (1,)), ((), ())),
        preferred_element_type=jnp.float32) + c2t_ref[...]               # (3, N)

    o_ref[...] = out_t


def foldingnet_decoder(input_code, grid_pts, p):
    """input_code: (B, D) f32, grid_pts: (N, 2) f32 -> (B, N, 3) f32."""
    B, D = input_code.shape
    N = grid_pts.shape[0]
    H = p["w1"].shape[0]

    w0g, w0c = p["w0"][:2], p["w0"][2:]          # (2, H), (D, H)
    v0g, v0c = p["v0"][:3], p["v0"][3:]          # (3, H), (D, H)

    # ---- batch-invariant precompute (tiny, done once per call in XLA) ----
    g0 = grid_pts @ w0g + p["b0"]                # (N, H)
    w_fuse = p["w2"] @ v0g                       # (H, H)
    bias_fuse = p["b2"] @ v0g + p["c0"]          # (1, H)
    v2t = p["v2"].T                              # (3, H)
    c2t = p["c2"].reshape(3, 1)                  # (3, 1)

    # ---- rank-1 per-batch code contributions ----
    code0 = (input_code @ w0c).reshape(B, 1, H)              # (B, 1, H)
    code1 = (input_code @ v0c + bias_fuse).reshape(B, 1, H)  # (B, 1, H)

    def const(shape):
        nd = len(shape)
        return pl.BlockSpec(shape, lambda b, _nd=nd: (0,) * _nd)

    per_batch_row = pl.BlockSpec((None, 1, H), lambda b: (b, 0, 0))

    out_t = pl.pallas_call(
        _foldingnet_decoder_kernel,
        out_shape=jax.ShapeDtypeStruct((B, 3, N), jnp.float32),
        grid=(B,),
        in_specs=[
            const((N, H)),        # g0      (resident across the batch grid)
            per_batch_row,        # code0   (one (1,H) row per step)
            per_batch_row,        # code1
            const((H, H)),        # w1
            const((1, H)),        # b1
            const((H, H)),        # w_fuse
            const((H, H)),        # v1
            const((1, H)),        # c1
            const((3, H)),        # v2t
            const((3, 1)),        # c2t
        ],
        out_specs=pl.BlockSpec((None, 3, N), lambda b: (b, 0, 0)),
        compiler_params=pltpu.CompilerParams(dimension_semantics=("parallel",)),
    )(g0, code0, code1, p["w1"], p["b1"], w_fuse, p["v1"], p["c1"], v2t, c2t)

    # TODO(synk): for large B (>~8), block several batches per grid step (fold
    # batch into the matmul M dimension) to amortize the ~0.35us/step overhead;
    # at B=2 one step per batch already keeps both v7x TensorCores busy.
    return jnp.transpose(out_t, (0, 2, 1))       # (B, N, 3)


def init_params(key, input_dim, hidden):
    """Deterministic torch.nn.Linear-style (uniform +-1/sqrt(fan_in)) init.

    Weights stored as (in_features, out_features), i.e. transposed vs torch.
    """
    def lin(k, fan_in, fan_out):
        kw, kb = jax.random.split(k)
        bound = 1.0 / np.sqrt(fan_in)
        w = jax.random.uniform(kw, (fan_in, fan_out), jnp.float32, -bound, bound)
        b = jax.random.uniform(kb, (1, fan_out), jnp.float32, -bound, bound)
        return w, b

    keys = jax.random.split(key, 6)
    p = {}
    # fold 0: [D+2, H, H, 3]
    p["w0"], p["b0"] = lin(keys[0], input_dim + 2, hidden)
    p["w1"], p["b1"] = lin(keys[1], hidden, hidden)
    p["w2"], p["b2"] = lin(keys[2], hidden, 3)
    # fold 1: [D+3, H, H, 3]
    p["v0"], p["c0"] = lin(keys[3], input_dim + 3, hidden)
    p["v1"], p["c1"] = lin(keys[4], hidden, hidden)
    p["v2"], p["c2"] = lin(keys[5], hidden, 3)
    return p


def reference(input_code, grid_pts, p):
    """Pure-JAX replica of the PyTorch forward (explicit concat form)."""
    B, D = input_code.shape
    N = grid_pts.shape[0]
    code = jnp.broadcast_to(input_code[:, None, :], (B, N, D))
    x = jnp.broadcast_to(grid_pts[None], (B, N, 2))

    h = jax.nn.relu(jnp.concatenate([x, code], axis=2) @ p["w0"] + p["b0"])
    h = jax.nn.relu(h @ p["w1"] + p["b1"])
    x = h @ p["w2"] + p["b2"]

    h = jax.nn.relu(jnp.concatenate([x, code], axis=2) @ p["v0"] + p["c0"])
    h = jax.nn.relu(h @ p["v1"] + p["c1"])
    x = h @ p["v2"] + p["c2"]
    return x


if __name__ == "__main__":
    # Small shapes consistent with the module: batch=2, code dim=32,
    # hidden layers [64, 64], grid samples (16, 8) -> N = 128 points.
    B, D, H = 2, 32, 64
    x_y_samples = (16, 8)
    sample_range = (-1.0, 1.0)

    # Folding grid (same construction as the PyTorch module).
    xs = np.linspace(sample_range[0], sample_range[1], x_y_samples[0])
    ys = np.linspace(sample_range[0], sample_range[1], x_y_samples[1])
    grid_pts = jnp.asarray(
        np.array(list(itertools.product(xs, ys)), dtype=np.float32))  # (128, 2)

    key = jax.random.PRNGKey(0)
    k_code, k_params = jax.random.split(key)
    input_code = jax.random.normal(k_code, (B, D), jnp.float32)
    params = init_params(k_params, D, H)

    fn = jax.jit(foldingnet_decoder)
    out = jax.block_until_ready(fn(input_code, grid_pts, params))

    ref = reference(input_code, grid_pts, params)
    assert out.shape == (B, x_y_samples[0] * x_y_samples[1], 3), out.shape
    np.testing.assert_allclose(np.asarray(out), np.asarray(ref), rtol=1e-4, atol=1e-4)

    print("KERNEL_OK")
</pallas_src>

<mosaic_0001>
module attributes {stable_mosaic.version = 11 : i64} {
  func.func @_foldingnet_decoder_kernel(%arg0: i32, %arg1: memref<128x64xf32, #tpu.memory_space<vmem>>, %arg2: memref<1x1x64xf32, #tpu.memory_space<vmem>>, %arg3: memref<1x1x64xf32, #tpu.memory_space<vmem>>, %arg4: memref<64x64xf32, #tpu.memory_space<vmem>>, %arg5: memref<1x64xf32, #tpu.memory_space<vmem>>, %arg6: memref<64x64xf32, #tpu.memory_space<vmem>>, %arg7: memref<64x64xf32, #tpu.memory_space<vmem>>, %arg8: memref<1x64xf32, #tpu.memory_space<vmem>>, %arg9: memref<3x64xf32, #tpu.memory_space<vmem>>, %arg10: memref<3x1xf32, #tpu.memory_space<vmem>>, %arg11: memref<1x3x128xf32, #tpu.memory_space<vmem>>) attributes {dimension_semantics = [#tpu.dimension_semantics<parallel>], iteration_bounds = array<i64: 2>, scalar_prefetch = 0 : i64, scratch_operands = 0 : i64, tpu.core_type = #tpu.core_type<tc>, window_params = [{pipeline_mode = #tpu.pipeline_mode<synchronous>, transform_indices = @transform_0, window_bounds = array<i64: 128, 64>}, {transform_indices = @transform_1, window_bounds = array<i64: 1, 1, 64>}, {transform_indices = @transform_2, window_bounds = array<i64: 1, 1, 64>}, {pipeline_mode = #tpu.pipeline_mode<synchronous>, transform_indices = @transform_3, window_bounds = array<i64: 64, 64>}, {pipeline_mode = #tpu.pipeline_mode<synchronous>, transform_indices = @transform_4, window_bounds = array<i64: 1, 64>}, {pipeline_mode = #tpu.pipeline_mode<synchronous>, transform_indices = @transform_5, window_bounds = array<i64: 64, 64>}, {pipeline_mode = #tpu.pipeline_mode<synchronous>, transform_indices = @transform_6, window_bounds = array<i64: 64, 64>}, {pipeline_mode = #tpu.pipeline_mode<synchronous>, transform_indices = @transform_7, window_bounds = array<i64: 1, 64>}, {pipeline_mode = #tpu.pipeline_mode<synchronous>, transform_indices = @transform_8, window_bounds = array<i64: 3, 64>}, {pipeline_mode = #tpu.pipeline_mode<synchronous>, transform_indices = @transform_9, window_bounds = array<i64: 3, 1>}, {transform_indices = @transform_10, window_bounds = array<i64: 1, 3, 128>}]} {
    %c0 = arith.constant 0 : index
    %c0_0 = arith.constant 0 : index
    %0 = vector.load %arg1[%c0, %c0_0] : memref<128x64xf32, #tpu.memory_space<vmem>>, vector<128x64xf32>
    %c0_1 = arith.constant 0 : index
    %c0_2 = arith.constant 0 : index
    %c0_3 = arith.constant 0 : index
    %1 = vector.load %arg2[%c0_1, %c0_2, %c0_3] : memref<1x1x64xf32, #tpu.memory_space<vmem>>, vector<1x1x64xf32>
    %2 = vector.shape_cast %1 : vector<1x1x64xf32> to vector<1x64xf32>
    %3 = vector.broadcast %2 : vector<1x64xf32> to vector<128x64xf32>
    %4 = arith.addf %0, %3 : vector<128x64xf32>
    %cst = arith.constant 0.000000e+00 : f32
    %5 = vector.broadcast %cst : f32 to vector<128x64xf32>
    %6 = arith.maximumf %4, %5 : vector<128x64xf32>
    %c0_4 = arith.constant 0 : index
    %c0_5 = arith.constant 0 : index
    %7 = vector.load %arg4[%c0_4, %c0_5] : memref<64x64xf32, #tpu.memory_space<vmem>>, vector<64x64xf32>
    %cst_6 = arith.constant dense<0.000000e+00> : vector<128x64xf32>
    %8 = tpu.matmul %6, %7, %cst_6 {dimension_numbers = #tpu.dot_dimension_numbers<[1], [0], [0], [1], [0, 0, 1, 1], [], []>} : vector<128x64xf32>, vector<64x64xf32>, vector<128x64xf32> -> vector<128x64xf32>
    %c0_7 = arith.constant 0 : index
    %c0_8 = arith.constant 0 : index
    %9 = vector.load %arg5[%c0_7, %c0_8] : memref<1x64xf32, #tpu.memory_space<vmem>>, vector<1x64xf32>
    %10 = vector.broadcast %9 : vector<1x64xf32> to vector<128x64xf32>
    %11 = arith.addf %8, %10 : vector<128x64xf32>
    %cst_9 = arith.constant 0.000000e+00 : f32
    %12 = vector.broadcast %cst_9 : f32 to vector<128x64xf32>
    %13 = arith.maximumf %11, %12 : vector<128x64xf32>
    %c0_10 = arith.constant 0 : index
    %c0_11 = arith.constant 0 : index
    %14 = vector.load %arg6[%c0_10, %c0_11] : memref<64x64xf32, #tpu.memory_space<vmem>>, vector<64x64xf32>
    %cst_12 = arith.constant dense<0.000000e+00> : vector<128x64xf32>
    %15 = tpu.matmul %13, %14, %cst_12 {dimension_numbers = #tpu.dot_dimension_numbers<[1], [0], [0], [1], [0, 0, 1, 1], [], []>} : vector<128x64xf32>, vector<64x64xf32>, vector<128x64xf32> -> vector<128x64xf32>
    %c0_13 = arith.constant 0 : index
    %c0_14 = arith.constant 0 : index
    %c0_15 = arith.constant 0 : index
    %16 = vector.load %arg3[%c0_13, %c0_14, %c0_15] : memref<1x1x64xf32, #tpu.memory_space<vmem>>, vector<1x1x64xf32>
    %17 = vector.shape_cast %16 : vector<1x1x64xf32> to vector<1x64xf32>
    %18 = vector.broadcast %17 : vector<1x64xf32> to vector<128x64xf32>
    %19 = arith.addf %15, %18 : vector<128x64xf32>
    %cst_16 = arith.constant 0.000000e+00 : f32
    %20 = vector.broadcast %cst_16 : f32 to vector<128x64xf32>
    %21 = arith.maximumf %19, %20 : vector<128x64xf32>
    %c0_17 = arith.constant 0 : index
    %c0_18 = arith.constant 0 : index
    %22 = vector.load %arg7[%c0_17, %c0_18] : memref<64x64xf32, #tpu.memory_space<vmem>>, vector<64x64xf32>
    %cst_19 = arith.constant dense<0.000000e+00> : vector<128x64xf32>
    %23 = tpu.matmul %21, %22, %cst_19 {dimension_numbers = #tpu.dot_dimension_numbers<[1], [0], [0], [1], [0, 0, 1, 1], [], []>} : vector<128x64xf32>, vector<64x64xf32>, vector<128x64xf32> -> vector<128x64xf32>
    %c0_20 = arith.constant 0 : index
    %c0_21 = arith.constant 0 : index
    %24 = vector.load %arg8[%c0_20, %c0_21] : memref<1x64xf32, #tpu.memory_space<vmem>>, vector<1x64xf32>
    %25 = vector.broadcast %24 : vector<1x64xf32> to vector<128x64xf32>
    %26 = arith.addf %23, %25 : vector<128x64xf32>
    %cst_22 = arith.constant 0.000000e+00 : f32
    %27 = vector.broadcast %cst_22 : f32 to vector<128x64xf32>
    %28 = arith.maximumf %26, %27 : vector<128x64xf32>
    %c0_23 = arith.constant 0 : index
    %c0_24 = arith.constant 0 : index
    %29 = vector.load %arg9[%c0_23, %c0_24] : memref<3x64xf32, #tpu.memory_space<vmem>>, vector<3x64xf32>
    %cst_25 = arith.constant dense<0.000000e+00> : vector<3x128xf32>
    %30 = tpu.matmul %29, %28, %cst_25 {dimension_numbers = #tpu.dot_dimension_numbers<[1], [1], [0], [0], [0, 0, 1, 0], [], []>} : vector<3x64xf32>, vector<128x64xf32>, vector<3x128xf32> -> vector<3x128xf32>
    %c0_26 = arith.constant 0 : index
    %c0_27 = arith.constant 0 : index
    %31 = vector.load %arg10[%c0_26, %c0_27] : memref<3x1xf32, #tpu.memory_space<vmem>>, vector<3x1xf32>
    %32 = vector.broadcast %31 : vector<3x1xf32> to vector<3x128xf32>
    %33 = arith.addf %30, %32 : vector<3x128xf32>
    %c0_28 = arith.constant 0 : index
    %c0_29 = arith.constant 0 : index
    %c0_30 = arith.constant 0 : index
    %34 = vector.load %arg11[%c0_28, %c0_29, %c0_30] : memref<1x3x128xf32, #tpu.memory_space<vmem>>, vector<1x3x128xf32>
    %35 = vector.shape_cast %34 : vector<1x3x128xf32> to vector<3x128xf32>
    %36 = vector.shape_cast %33 : vector<3x128xf32> to vector<1x3x128xf32>
    tpu.vector_store %arg11[%c0_28, %c0_29, %c0_30], %36 {strides = array<i32>} : memref<1x3x128xf32, #tpu.memory_space<vmem>>, vector<1x3x128xf32>,
    return
  }
  func.func @transform_0(%arg0: i32) -> (i32, i32) {
    %c0_i32 = arith.constant 0 : i32
    %c0_i32_0 = arith.constant 0 : i32
    %c0_i32_1 = arith.constant 0 : i32
    return %c0_i32, %c0_i32_0 : i32, i32
  }
  func.func @transform_1(%arg0: i32) -> (i32, i32, i32) {
    %c0_i32 = arith.constant 0 : i32
    %c0_i32_0 = arith.constant 0 : i32
    %c0_i32_1 = arith.constant 0 : i32
    return %arg0, %c0_i32, %c0_i32_0 : i32, i32, i32
  }
  func.func @transform_2(%arg0: i32) -> (i32, i32, i32) {
    %c0_i32 = arith.constant 0 : i32
    %c0_i32_0 = arith.constant 0 : i32
    %c0_i32_1 = arith.constant 0 : i32
    return %arg0, %c0_i32, %c0_i32_0 : i32, i32, i32
  }
  func.func @transform_3(%arg0: i32) -> (i32, i32) {
    %c0_i32 = arith.constant 0 : i32
    %c0_i32_0 = arith.constant 0 : i32
    %c0_i32_1 = arith.constant 0 : i32
    return %c0_i32, %c0_i32_0 : i32, i32
  }
  func.func @transform_4(%arg0: i32) -> (i32, i32) {
    %c0_i32 = arith.constant 0 : i32
    %c0_i32_0 = arith.constant 0 : i32
    %c0_i32_1 = arith.constant 0 : i32
    return %c0_i32, %c0_i32_0 : i32, i32
  }
  func.func @transform_5(%arg0: i32) -> (i32, i32) {
    %c0_i32 = arith.constant 0 : i32
    %c0_i32_0 = arith.constant 0 : i32
    %c0_i32_1 = arith.constant 0 : i32
    return %c0_i32, %c0_i32_0 : i32, i32
  }
  func.func @transform_6(%arg0: i32) -> (i32, i32) {
    %c0_i32 = arith.constant 0 : i32
    %c0_i32_0 = arith.constant 0 : i32
    %c0_i32_1 = arith.constant 0 : i32
    return %c0_i32, %c0_i32_0 : i32, i32
  }
  func.func @transform_7(%arg0: i32) -> (i32, i32) {
    %c0_i32 = arith.constant 0 : i32
    %c0_i32_0 = arith.constant 0 : i32
    %c0_i32_1 = arith.constant 0 : i32
    return %c0_i32, %c0_i32_0 : i32, i32
  }
  func.func @transform_8(%arg0: i32) -> (i32, i32) {
    %c0_i32 = arith.constant 0 : i32
    %c0_i32_0 = arith.constant 0 : i32
    %c0_i32_1 = arith.constant 0 : i32
    return %c0_i32, %c0_i32_0 : i32, i32
  }
  func.func @transform_9(%arg0: i32) -> (i32, i32) {
    %c0_i32 = arith.constant 0 : i32
    %c0_i32_0 = arith.constant 0 : i32
    %c0_i32_1 = arith.constant 0 : i32
    return %c0_i32, %c0_i32_0 : i32, i32
  }
  func.func @transform_10(%arg0: i32) -> (i32, i32, i32) {
    %c0_i32 = arith.constant 0 : i32
    %c0_i32_0 = arith.constant 0 : i32
    %c0_i32_1 = arith.constant 0 : i32
    return %arg0, %c0_i32, %c0_i32_0 : i32, i32, i32
  }
}

</mosaic_0001>

<bundles_post_ra>
// kernel: foldingnet_decoder.1
= control target key start
LH: loop header
LB: loop body
LE: loop exit
PB: predicated region body
PF: predicated region fallthrough
CT: control target
= control target key end

     0   :  { %s1131_s13 = smov 0   ;;  %s1397_s0 = inlined_call_operand.vmem [shape: f32[128,64], index: 0, kind: input, shape index: {}]   ;;  %s1398_s1 = inlined_call_operand.vmem [shape: f32[2,1,64], index: 1, kind: input, shape index: {}]   ;;  %s1399_s2 = inlined_call_operand.vmem [shape: f32[2,1,64], index: 2, kind: input, shape index: {}]   ;;  %s1400_s3 = inlined_call_operand.vmem [shape: f32[64,64], index: 3, kind: input, shape index: {}]   ;;  %s1401_s4 = inlined_call_operand.vmem [shape: f32[1,64], index: 4, kind: input, shape index: {}]   ;;  %s1402_s5 = inlined_call_operand.vmem [shape: f32[64,64], index: 5, kind: input, shape index: {}]   ;;  %s1403_s6 = inlined_call_operand.vmem [shape: f32[64,64], index: 6, kind: input, shape index: {}]   ;;  %s1404_s7 = inlined_call_operand.vmem [shape: f32[1,64], index: 7, kind: input, shape index: {}]   ;;  %s1405_s8 = inlined_call_operand.vmem [shape: f32[3,64], index: 8, kind: input, shape index: {}]   ;;  %s1406_s9 = inlined_call_operand.vmem [shape: f32[3,1], index: 9, kind: input, shape index: {}]   ;;  %s1407_s10 = inlined_call_operand.vmem [shape: f32[2,3,128], index: 10, kind: output, shape index: {}]  }
   0x1 LB: > { %s980_s14 = sadd.s32 4294967295, %s1073_s13   ;;  %p984_p0 = scmp.ge.s32.totalorder %s1073_s13, 1  ;;  %s1073_s13 = sphi %s1131_s13, %s20_s13  }
   0x2   : > { %p318_p1 = scmp.lt.s32.totalorder %s1073_s13, 3 }
   0x4   : > { %p319_p2 = pnand %p984_p0, %p318_p1 }
   0x5   : > { %p356_p3 = scmp.lt.s32.totalorder (!%p319_p2), %s980_s14, 1 }
   0x6   : > { %322 = sbr.rel (%p319_p2) target bundleno = 741 (0x2e5), region = 60 }
   0xb   : > { %v425_v0 = vld [vmem:[%s1400_s3 + $0x38] sm:$0xff]  ;;  %v424_v1 = vld [vmem:[%s1400_s3 + $0x30] sm:$0xff]  ;;  %v423_v2 = vld [vmem:[%s1400_s3 + $0x28] sm:$0xff]  ;;  %s1409_s14 = smov (!%p356_p3, %s980_s14), 1  ;;  %vm430_vm0 = vcmask 523264  }
   0xc   : > { %487 = vmatpush.msra.mxu0 %v425_v0  ;;  %v422_v3 = vld [vmem:[%s1400_s3 + $0x20] sm:$0xff]  ;;  %s358_s25 = scalar_lea.vmem %s1398_s1, %s1409_s14  ;;  %v421_v6 = vld [vmem:[%s1400_s3 + $0x18] sm:$0xff]  ;;  %v420_v7 = vld [vmem:[%s1400_s3 + $0x10] sm:$0xff]  ;;  %s361_s12 = scalar_lea.vmem %s1399_s2, %s1409_s14 }
   0xd   : > { %v366_v4 = vld [vmem:[%s1397_s0] sm:$0xff]  ;;  %v419_v9 = vld [vmem:[%s1400_s3 + $0x8] sm:$0xff]  ;;  %v368_v15 = vld [vmem:[%s1397_s0 + $0x10] sm:$0xff]  ;;  %s985_s21 = sshll.u32 %s1409_s14, 2 }
   0xe   : > { %488 = vmatpush.msra.mxu0 %v424_v1  ;;  %v1160_v5 = vld [vmem:[%s358_s25] ss:$0 sm:$0xff]  ;;  %v367_v12 = vld [vmem:[%s1397_s0 + $0x8] sm:$0xff]  ;;  %v369_v18 = vld [vmem:[%s1397_s0 + $0x18] sm:$0xff]  ;;  %s365_s24 = scalar_lea.vmem %s1407_s10, %s985_s21 }
   0xf   : > { %v386_v8 = vadd.f32 %v1160_v5, %v366_v4  ;;  %v418_v10 = vld [vmem:[%s1400_s3] sm:$0xff]  ;;  %v387_v13 = vadd.f32 %v1160_v5, %v367_v12  ;;  %v388_v16 = vadd.f32 %v1160_v5, %v368_v15  ;;  %v389_v19 = vadd.f32 %v1160_v5, %v369_v18  ;;  %v371_v24 = vld [vmem:[%s1397_s0 + $0x28] sm:$0xff]  ;;  %v372_v27 = vld [vmem:[%s1397_s0 + $0x30] sm:$0xff] }
  0x10   : > { %489 = vmatpush.msra.mxu0 %v423_v2  ;;  %v370_v21 = vld [vmem:[%s1397_s0 + $0x20] sm:$0xff]  ;;  %v391_v25 = vadd.f32 %v1160_v5, %v371_v24  ;;  %v392_v28 = vadd.f32 %v1160_v5, %v372_v27  ;;  %v373_v30 = vld [vmem:[%s1397_s0 + $0x38] sm:$0xff]  ;;  %v375_v36 = vld [vmem:[%s1397_s0 + $0x48] sm:$0xff] }
  0x11   : > { %v402_v11 = vmax.f32 %v386_v8, 0.0  ;;  %v403_v14 = vmax.f32 %v387_v13, 0.0  ;;  %v404_v17 = vmax.f32 %v388_v16, 0.0  ;;  %v405_v20 = vmax.f32 %v389_v19, 0.0  ;;  %v374_v33 = vld [vmem:[%s1397_s0 + $0x40] sm:$0xff]  ;;  %v376_v39 = vld [vmem:[%s1397_s0 + $0x50] sm:$0xff] }
  0x12   : > { %490 = vmatpush.msra.mxu0 %v422_v3  ;;  %v390_v22 = vadd.f32 %v1160_v5, %v370_v21  ;;  %v407_v26 = vmax.f32 %v391_v25, 0.0  ;;  %v408_v29 = vmax.f32 %v392_v28, 0.0  ;;  %v393_v31 = vadd.f32 %v1160_v5, %v373_v30  ;;  %v377_v42 = vld [vmem:[%s1397_s0 + $0x58] sm:$0xff]  ;;  %v566_v45 = vld [vmem:[%s1402_s5 + $0x30] sm:$0xff]  ;;  %v565_v46 = vld [vmem:[%s1402_s5 + $0x28] sm:$0xff] }
  0x13   : > { %v394_v34 = vadd.f32 %v1160_v5, %v374_v33  ;;  %v395_v37 = vadd.f32 %v1160_v5, %v375_v36  ;;  %v396_v40 = vadd.f32 %v1160_v5, %v376_v39  ;;  %v397_v43 = vadd.f32 %v1160_v5, %v377_v42  ;;  %v567_v44 = vld [vmem:[%s1402_s5 + $0x38] sm:$0xff]  ;;  %v378_v48 = vld [vmem:[%s1397_s0 + $0x60] sm:$0xff]  ;;  %v562_v53 = vld [vmem:[%s1402_s5 + $0x10] sm:$0xff] }
  0x14   : > { %491 = vmatpush.msra.mxu0 %v421_v6  ;;  %v406_v23 = vmax.f32 %v390_v22, 0.0  ;;  %v409_v32 = vmax.f32 %v393_v31, 0.0  ;;  %628 = vmatpush.msra.mxu1 %v567_v44  ;;  %v398_v49 = vadd.f32 %v1160_v5, %v378_v48  ;;  %v564_v50 = vld [vmem:[%s1402_s5 + $0x20] sm:$0xff]  ;;  %v563_v51 = vld [vmem:[%s1402_s5 + $0x18] sm:$0xff]  ;;  %v379_v54 = vld [vmem:[%s1397_s0 + $0x68] sm:$0xff] }
  0x15   : > { %v410_v35 = vmax.f32 %v394_v34, 0.0  ;;  %v411_v38 = vmax.f32 %v395_v37, 0.0  ;;  %v412_v41 = vmax.f32 %v396_v40, 0.0  ;;  %v413_v47 = vmax.f32 %v397_v43, 0.0  ;;  %v561_v55 = vld [vmem:[%s1402_s5 + $0x8] sm:$0xff]  ;;  %v560_v57 = vld [vmem:[%s1402_s5] sm:$0xff] }
  0x16   : > { %492 = vmatpush.msra.mxu0 %v420_v7  ;;  %629 = vmatpush.msra.mxu1 %v566_v45  ;;  %v414_v52 = vmax.f32 %v398_v49, 0.0  ;;  %v399_v56 = vadd.f32 %v1160_v5, %v379_v54  ;;  %v380_v59 = vld [vmem:[%s1397_s0 + $0x70] sm:$0xff]  ;;  %v381_v62 = vld [vmem:[%s1397_s0 + $0x78] sm:$0xff]  ;;  %v1278_v1 = vld [vmem:[%s1401_s4] ss:$0 sm:$0xff] }
  0x17   : > { %v400_v60 = vadd.f32 %v1160_v5, %v380_v59  ;;  %v401_v63 = vadd.f32 %v1160_v5, %v381_v62  ;;  %v706_v40 = vld [vmem:[%s1403_s6 + $0x28] sm:$0xff]  ;;  %v704_v42 = vld [vmem:[%s1403_s6 + $0x18] sm:$0xff]  ;;  %v703_v45 = vld [vmem:[%s1403_s6 + $0x10] sm:$0xff] }
  0x18   : > { %493 = vmatpush.msra.mxu0 %v419_v9  ;;  %630 = vmatpush.msra.mxu1 %v565_v46  ;;  %v415_v58 = vmax.f32 %v399_v56, 0.0  ;;  %v701_v48 = vld [vmem:[%s1403_s6] sm:$0xff] }
  0x19   : > { %v416_v61 = vmax.f32 %v400_v60, 0.0  ;;  %v417_v0 = vmax.f32 %v401_v63, 0.0 }
  0x1a   : > { %494 = vmatpush.msra.mxu0 %v418_v10  ;;  %631 = vmatpush.msra.mxu1 %v564_v50 }
  0x1b   : > { %986 = vmatmul.msk.f32.vlgmr.msra.gmra.mxu0 %vm430_vm0, %v402_v11 }
  0x1c   : > { %632 = vmatpush.msra.mxu1 %v563_v51 }
  0x1e   : > { %633 = vmatpush.msra.mxu1 %v562_v53 }
  0x20   : > { %634 = vmatpush.msra.mxu1 %v561_v55 }
  0x22   : > { %635 = vmatpush.msra.mxu1 %v560_v57 }
  0x23   : > { %987 = vmatmul.msk.f32.gmra.mxu0 %vm430_vm0, %v403_v14 }
  0x2b   : > { %988 = vmatmul.msk.f32.gmra.mxu0 %vm430_vm0, %v404_v17 }
  0x33   : > { %989 = vmatmul.msk.f32.gmra.mxu0 %vm430_vm0, %v405_v20 }
  0x3b   : > { %990 = vmatmul.msk.f32.gmra.mxu0 %vm430_vm0, %v406_v23 }
  0x43   : > { %991 = vmatmul.msk.f32.gmra.mxu0 %vm430_vm0, %v407_v26 }
  0x4b   : > { %992 = vmatmul.msk.f32.gmra.mxu0 %vm430_vm0, %v408_v29 }
  0x53   : > { %993 = vmatmul.msk.f32.gmra.mxu0 %vm430_vm0, %v409_v32 }
  0x5b   : > { %994 = vmatmul.msk.f32.gmra.mxu0 %vm430_vm0, %v410_v35  ;;  %v708_v35 = vld [vmem:[%s1403_s6 + $0x38] sm:$0xff] }
  0x5c   : > { %769 = vmatpush.msra.mxu2 %v708_v35 }
  0x63   : > { %995 = vmatmul.msk.f32.gmra.mxu0 %vm430_vm0, %v411_v38  ;;  %v707_v38 = vld [vmem:[%s1403_s6 + $0x30] sm:$0xff] }
  0x64   : > { %770 = vmatpush.msra.mxu2 %v707_v38 }
  0x66   : > { %771 = vmatpush.msra.mxu2 %v706_v40 }
  0x6b   : > { %996 = vmatmul.msk.f32.gmra.mxu0 %vm430_vm0, %v412_v41  ;;  %v705_v41 = vld [vmem:[%s1403_s6 + $0x20] sm:$0xff] }
  0x6c   : > { %772 = vmatpush.msra.mxu2 %v705_v41 }
  0x6e   : > { %773 = vmatpush.msra.mxu2 %v704_v42 }
  0x70   : > { %774 = vmatpush.msra.mxu2 %v703_v45 }
  0x73   : > { %997 = vmatmul.msk.f32.gmra.mxu0 %vm430_vm0, %v413_v47  ;;  %v702_v47 = vld [vmem:[%s1403_s6 + $0x8] sm:$0xff] }
  0x74   : > { %775 = vmatpush.msra.mxu2 %v702_v47 }
  0x76   : > { %776 = vmatpush.msra.mxu2 %v701_v48 }
  0x7b   : > { %998 = vmatmul.msk.f32.gmra.mxu0 %vm430_vm0, %v414_v52 }
  0x83   : > { %999 = vmatmul.msk.f32.gmra.mxu0 %vm430_vm0, %v415_v58  ;;  %v1065_v58 = vld [vmem:[%s361_s12] ss:$0 sm:$0xff] }
  0x8b   : > { %1000 = vmatmul.msk.f32.gmra.mxu0 %vm430_vm0, %v416_v61 }
  0x93   : > { %1001 = vmatmul.msk.f32.gmra.mxu0 %vm430_vm0, %v417_v0 }
  0x98   : > { %v496_v2 = vpop.f32.mrf.mxu0 }
  0x99   : > { %v497_v3 = vadd.f32 %v1278_v1, %v496_v2 }
  0x9b   : > { %v544_v4 = vmax.f32 %v497_v3, 0.0 }
  0x9d   : > { %1002 = vmatmul.msk.f32.vlgmr.msra.gmra.mxu1 %vm430_vm0, %v544_v4 }
  0xa0   : > { %v499_v6 = vpop.f32.mrf.mxu0 }
  0xa1   : > { %v500_v5 = vadd.f32 %v1278_v1, %v499_v6 }
  0xa3   : > { %v545_v7 = vmax.f32 %v500_v5, 0.0 }
  0xa5   : > { %1003 = vmatmul.msk.f32.gmra.mxu1 %vm430_vm0, %v545_v7 }
  0xa8   : > { %v502_v8 = vpop.f32.mrf.mxu0 }
  0xa9   : > { %v503_v9 = vadd.f32 %v1278_v1, %v502_v8 }
  0xab   : > { %v546_v10 = vmax.f32 %v503_v9, 0.0 }
  0xad   : > { %1004 = vmatmul.msk.f32.gmra.mxu1 %vm430_vm0, %v546_v10 }
  0xb0   : > { %v505_v11 = vpop.f32.mrf.mxu0 }
  0xb1   : > { %v506_v12 = vadd.f32 %v1278_v1, %v505_v11 }
  0xb3   : > { %v547_v13 = vmax.f32 %v506_v12, 0.0 }
  0xb5   : > { %1005 = vmatmul.msk.f32.gmra.mxu1 %vm430_vm0, %v547_v13 }
  0xb8   : > { %v508_v14 = vpop.f32.mrf.mxu0 }
  0xb9   : > { %v509_v15 = vadd.f32 %v1278_v1, %v508_v14 }
  0xbb   : > { %v548_v16 = vmax.f32 %v509_v15, 0.0 }
  0xbd   : > { %1006 = vmatmul.msk.f32.gmra.mxu1 %vm430_vm0, %v548_v16 }
  0xc0   : > { %v511_v17 = vpop.f32.mrf.mxu0 }
  0xc1   : > { %v512_v18 = vadd.f32 %v1278_v1, %v511_v17 }
  0xc3   : > { %v549_v19 = vmax.f32 %v512_v18, 0.0 }
  0xc5   : > { %1007 = vmatmul.msk.f32.gmra.mxu1 %vm430_vm0, %v549_v19 }
  0xc8   : > { %v514_v20 = vpop.f32.mrf.mxu0 }
  0xc9   : > { %v515_v21 = vadd.f32 %v1278_v1, %v514_v20 }
  0xcb   : > { %v550_v22 = vmax.f32 %v515_v21, 0.0 }
  0xcd   : > { %1008 = vmatmul.msk.f32.gmra.mxu1 %vm430_vm0, %v550_v22 }
  0xd0   : > { %v517_v23 = vpop.f32.mrf.mxu0 }
  0xd1   : > { %v518_v24 = vadd.f32 %v1278_v1, %v517_v23 }
  0xd3   : > { %v551_v25 = vmax.f32 %v518_v24, 0.0 }
  0xd5   : > { %1009 = vmatmul.msk.f32.gmra.mxu1 %vm430_vm0, %v551_v25 }
  0xd8   : > { %v520_v26 = vpop.f32.mrf.mxu0 }
  0xd9   : > { %v521_v27 = vadd.f32 %v1278_v1, %v520_v26 }
  0xdb   : > { %v552_v28 = vmax.f32 %v521_v27, 0.0 }
  0xdd   : > { %1010 = vmatmul.msk.f32.gmra.mxu1 %vm430_vm0, %v552_v28 }
  0xe0   : > { %v523_v29 = vpop.f32.mrf.mxu0 }
  0xe1   : > { %v524_v30 = vadd.f32 %v1278_v1, %v523_v29 }
  0xe3   : > { %v553_v31 = vmax.f32 %v524_v30, 0.0 }
  0xe5   : > { %1011 = vmatmul.msk.f32.gmra.mxu1 %vm430_vm0, %v553_v31 }
  0xe8   : > { %v526_v32 = vpop.f32.mrf.mxu0 }
  0xe9   : > { %v527_v33 = vadd.f32 %v1278_v1, %v526_v32 }
  0xeb   : > { %v554_v34 = vmax.f32 %v527_v33, 0.0 }
  0xed   : > { %1012 = vmatmul.msk.f32.gmra.mxu1 %vm430_vm0, %v554_v34 }
  0xf0   : > { %v529_v36 = vpop.f32.mrf.mxu0 }
  0xf1   : > { %v530_v37 = vadd.f32 %v1278_v1, %v529_v36 }
  0xf3   : > { %v555_v39 = vmax.f32 %v530_v37, 0.0 }
  0xf5   : > { %1013 = vmatmul.msk.f32.gmra.mxu1 %vm430_vm0, %v555_v39 }
  0xf8   : > { %v532_v43 = vpop.f32.mrf.mxu0 }
  0xf9   : > { %v533_v44 = vadd.f32 %v1278_v1, %v532_v43 }
  0xfb   : > { %v556_v46 = vmax.f32 %v533_v44, 0.0 }
  0xfd   : > { %1014 = vmatmul.msk.f32.gmra.mxu1 %vm430_vm0, %v556_v46 }
 0x100   : > { %v535_v49 = vpop.f32.mrf.mxu0 }
 0x101   : > { %v536_v50 = vadd.f32 %v1278_v1, %v535_v49 }
 0x103   : > { %v557_v51 = vmax.f32 %v536_v50, 0.0 }
 0x105   : > { %1015 = vmatmul.msk.f32.gmra.mxu1 %vm430_vm0, %v557_v51 }
 0x108   : > { %v538_v52 = vpop.f32.mrf.mxu0 }
 0x109   : > { %v539_v53 = vadd.f32 %v1278_v1, %v538_v52 }
 0x10b   : > { %v558_v54 = vmax.f32 %v539_v53, 0.0 }
 0x10d   : > { %1016 = vmatmul.msk.f32.gmra.mxu1 %vm430_vm0, %v558_v54 }
 0x110   : > { %v541_v55 = vpop.f32.mrf.mxu0 }
 0x111   : > { %v542_v56 = vadd.f32 %v1278_v1, %v541_v55 }
 0x113   : > { %v559_v57 = vmax.f32 %v542_v56, 0.0 }
 0x115   : > { %1017 = vmatmul.msk.f32.gmra.mxu1 %vm430_vm0, %v559_v57 }
 0x11a   : > { %v637_v59 = vpop.f32.mrf.mxu1 }
 0x11b   : > { %v638_v60 = vadd.f32 %v1065_v58, %v637_v59 }
 0x11d   : > { %v685_v61 = vmax.f32 %v638_v60, 0.0 }
 0x11f   : > { %1018 = vmatmul.msk.f32.vlgmr.msra.gmra.mxu2 %vm430_vm0, %v685_v61 }
 0x122   : > { %v640_v62 = vpop.f32.mrf.mxu1 }
 0x123   : > { %v641_v63 = vadd.f32 %v1065_v58, %v640_v62 }
 0x125   : > { %v686_v0 = vmax.f32 %v641_v63, 0.0 }
 0x127   : > { %1019 = vmatmul.msk.f32.gmra.mxu2 %vm430_vm0, %v686_v0 }
 0x12a   : > { %v643_v2 = vpop.f32.mrf.mxu1 }
 0x12b   : > { %v644_v1 = vadd.f32 %v1065_v58, %v643_v2 }
 0x12d   : > { %v687_v3 = vmax.f32 %v644_v1, 0.0 }
 0x12f   : > { %1020 = vmatmul.msk.f32.gmra.mxu2 %vm430_vm0, %v687_v3 }
 0x132   : > { %v646_v4 = vpop.f32.mrf.mxu1 }
 0x133   : > { %v647_v6 = vadd.f32 %v1065_v58, %v646_v4 }
 0x135   : > { %v688_v5 = vmax.f32 %v647_v6, 0.0 }
 0x137   : > { %1021 = vmatmul.msk.f32.gmra.mxu2 %vm430_vm0, %v688_v5 }
 0x13a   : > { %v649_v7 = vpop.f32.mrf.mxu1 }
 0x13b   : > { %v650_v8 = vadd.f32 %v1065_v58, %v649_v7 }
 0x13d   : > { %v689_v9 = vmax.f32 %v650_v8, 0.0 }
 0x13f   : > { %1022 = vmatmul.msk.f32.gmra.mxu2 %vm430_vm0, %v689_v9 }
 0x142   : > { %v652_v10 = vpop.f32.mrf.mxu1 }
 0x143   : > { %v653_v11 = vadd.f32 %v1065_v58, %v652_v10 }
 0x145   : > { %v690_v12 = vmax.f32 %v653_v11, 0.0 }
 0x147   : > { %1023 = vmatmul.msk.f32.gmra.mxu2 %vm430_vm0, %v690_v12 }
 0x14a   : > { %v655_v13 = vpop.f32.mrf.mxu1 }
 0x14b   : > { %v656_v14 = vadd.f32 %v1065_v58, %v655_v13 }
 0x14d   : > { %v691_v15 = vmax.f32 %v656_v14, 0.0 }
 0x14f   : > { %1024 = vmatmul.msk.f32.gmra.mxu2 %vm430_vm0, %v691_v15  ;;  %v843_v15 = vld [vmem:[%s1406_s9] sm:$0x7] }
 0x152   : > { %v658_v16 = vpop.f32.mrf.mxu1 }
 0x153   : > { %v659_v17 = vadd.f32 %v1065_v58, %v658_v16  ;;  %v1075_v16 = vmov 0  }
 0x154   : > { %1062 = vset.pattern.permute.xlu0 %v1075_v16 }
 0x155   : > { %v692_v18 = vmax.f32 %v659_v17, 0.0  ;;  %846 = vperm.xlu0 %1062, %v843_v15  }
 0x157   : > { %1025 = vmatmul.msk.f32.gmra.mxu2 %vm430_vm0, %v692_v18 }
 0x15a   : > { %v661_v19 = vpop.f32.mrf.mxu1 }
 0x15b   : > { %v662_v20 = vadd.f32 %v1065_v58, %v661_v19 }
 0x15d   : > { %v693_v21 = vmax.f32 %v662_v20, 0.0 }
 0x15f   : > { %1026 = vmatmul.msk.f32.gmra.mxu2 %vm430_vm0, %v693_v21 }
 0x162   : > { %v664_v22 = vpop.f32.mrf.mxu1 }
 0x163   : > { %v665_v23 = vadd.f32 %v1065_v58, %v664_v22 }
 0x165   : > { %v694_v24 = vmax.f32 %v665_v23, 0.0 }
 0x167   : > { %1027 = vmatmul.msk.f32.gmra.mxu2 %vm430_vm0, %v694_v24 }
 0x16a   : > { %v667_v25 = vpop.f32.mrf.mxu1 }
 0x16b   : > { %v668_v26 = vadd.f32 %v1065_v58, %v667_v25 }
 0x16d   : > { %v695_v27 = vmax.f32 %v668_v26, 0.0 }
 0x16f   : > { %1028 = vmatmul.msk.f32.gmra.mxu2 %vm430_vm0, %v695_v27 }
 0x172   : > { %v670_v28 = vpop.f32.mrf.mxu1 }
 0x173   : > { %v671_v29 = vadd.f32 %v1065_v58, %v670_v28 }
 0x175   : > { %v696_v30 = vmax.f32 %v671_v29, 0.0 }
 0x177   : > { %1029 = vmatmul.msk.f32.gmra.mxu2 %vm430_vm0, %v696_v30  ;;  %v842_v30 = vld [vmem:[%s1405_s8] sm:$0x7] }
 0x17a   : > { %v673_v31 = vpop.f32.mrf.mxu1 }
 0x17b   : > { %v674_v32 = vadd.f32 %v1065_v58, %v673_v31 }
 0x17d   : > { %v697_v33 = vmax.f32 %v674_v32, 0.0 }
 0x17f   : > { %1030 = vmatmul.msk.f32.gmra.mxu2 %vm430_vm0, %v697_v33 }
 0x182   : > { %v676_v34 = vpop.f32.mrf.mxu1 }
 0x183   : > { %v677_v35 = vadd.f32 %v1065_v58, %v676_v34 }
 0x185   : > { %v698_v36 = vmax.f32 %v677_v35, 0.0 }
 0x187   : > { %1031 = vmatmul.msk.f32.gmra.mxu2 %vm430_vm0, %v698_v36 }
 0x18a   : > { %v679_v37 = vpop.f32.mrf.mxu1 }
 0x18b   : > { %v680_v38 = vadd.f32 %v1065_v58, %v679_v37 }
 0x18d   : > { %v699_v39 = vmax.f32 %v680_v38, 0.0 }
 0x18f   : > { %1032 = vmatmul.msk.f32.gmra.mxu2 %vm430_vm0, %v699_v39 }
 0x192   : > { %v682_v40 = vpop.f32.mrf.mxu1 }
 0x193   : > { %v683_v41 = vadd.f32 %v1065_v58, %v682_v40  ;;  %v1066_v58 = vld [vmem:[%s1404_s7] ss:$0 sm:$0xff] }
 0x195   : > { %v700_v42 = vmax.f32 %v683_v41, 0.0 }
 0x197   : > { %1033 = vmatmul.msk.f32.gmra.mxu2 %vm430_vm0, %v700_v42 }
 0x1a2   : > { %v1361_v43 = vpop.f32.mrf.mxu2 }
 0x1a3   : > { %v779_v27 = vadd.f32 %v1066_v58, %v1361_v43 }
 0x1a5   : > { %v826_v29 = vmax.f32 %v779_v27, 0.0 }
 0x1aa   : > { %v781_v44 = vpop.f32.mrf.mxu2 }
 0x1ab   : > { %v782_v25 = vadd.f32 %v1066_v58, %v781_v44 }
 0x1ad   : > { %v827_v28 = vmax.f32 %v782_v25, 0.0 }
 0x1b2   : > { %v784_v45 = vpop.f32.mrf.mxu2 }
 0x1b3   : > { %v785_v23 = vadd.f32 %v1066_v58, %v784_v45 }
 0x1b5   : > { %v828_v26 = vmax.f32 %v785_v23, 0.0 }
 0x1ba   : > { %v787_v46 = vpop.f32.mrf.mxu2 }
 0x1bb   : > { %v788_v21 = vadd.f32 %v1066_v58, %v787_v46 }
 0x1bd   : > { %v829_v24 = vmax.f32 %v788_v21, 0.0 }
 0x1c2   : > { %v790_v47 = vpop.f32.mrf.mxu2 }
 0x1c3   : > { %v791_v19 = vadd.f32 %v1066_v58, %v790_v47 }
 0x1c5   : > { %v830_v22 = vmax.f32 %v791_v19, 0.0 }
 0x1c7   : > { %v847_v31 = vpop.permute.xlu0 %846 }
 0x1ca   : > { %v793_v48 = vpop.f32.mrf.mxu2 }
 0x1cb   : > { %v794_v17 = vadd.f32 %v1066_v58, %v793_v48 }
 0x1cd   : > { %v831_v20 = vmax.f32 %v794_v17, 0.0 }
 0x1d2   : > { %v796_v49 = vpop.f32.mrf.mxu2 }
 0x1d3   : > { %v797_v13 = vadd.f32 %v1066_v58, %v796_v49 }
 0x1d5   : > { %v832_v18 = vmax.f32 %v797_v13, 0.0 }
 0x1da   : > { %v799_v50 = vpop.f32.mrf.mxu2 }
 0x1db   : > { %v800_v11 = vadd.f32 %v1066_v58, %v799_v50 }
 0x1dd   : > { %v833_v14 = vmax.f32 %v800_v11, 0.0 }
 0x1e2   : > { %v802_v51 = vpop.f32.mrf.mxu2 }
 0x1e3   : > { %v803_v9 = vadd.f32 %v1066_v58, %v802_v51 }
 0x1e5   : > { %v834_v12 = vmax.f32 %v803_v9, 0.0 }
 0x1ea   : > { %v805_v52 = vpop.f32.mrf.mxu2 }
 0x1eb   : > { %v806_v7 = vadd.f32 %v1066_v58, %v805_v52 }
 0x1ed   : > { %v835_v10 = vmax.f32 %v806_v7, 0.0 }
 0x1f2   : > { %v808_v53 = vpop.f32.mrf.mxu2 }
 0x1f3   : > { %v809_v6 = vadd.f32 %v1066_v58, %v808_v53 }
 0x1f5   : > { %v836_v8 = vmax.f32 %v809_v6, 0.0 }
 0x1fa   : > { %v811_v54 = vpop.f32.mrf.mxu2 }
 0x1fb   : > { %v812_v3 = vadd.f32 %v1066_v58, %v811_v54 }
 0x1fd   : > { %v837_v5 = vmax.f32 %v812_v3, 0.0 }
 0x202   : > { %v814_v55 = vpop.f32.mrf.mxu2 }
 0x203   : > { %v815_v2 = vadd.f32 %v1066_v58, %v814_v55 }
 0x205   : > { %v838_v4 = vmax.f32 %v815_v2, 0.0 }
 0x20a   : > { %v817_v56 = vpop.f32.mrf.mxu2 }
 0x20b   : > { %v818_v63 = vadd.f32 %v1066_v58, %v817_v56 }
 0x20d   : > { %v839_v1 = vmax.f32 %v818_v63, 0.0 }
 0x212   : > { %v820_v57 = vpop.f32.mrf.mxu2 }
 0x213   : > { %v821_v61 = vadd.f32 %v1066_v58, %v820_v57 }
 0x215   : > { %v840_v0 = vmax.f32 %v821_v61, 0.0 }
 0x21a   : > { %v823_v59 = vpop.f32.mrf.mxu2 }
 0x21b   : > { %v824_v60 = vadd.f32 %v1066_v58, %v823_v59 }
 0x21d   : > { %v841_v62 = vmax.f32 %v824_v60, 0.0 }
 0x21f   : > { %1034 = vmatpush.xpose.msk.msra.mxu3 %vm430_vm0, %v841_v62 }
 0x223   : > { %1035 = vmatpush.xpose.msk.msra.mxu3 %vm430_vm0, %v840_v0 }
 0x227   : > { %1036 = vmatpush.xpose.msk.msra.mxu3 %vm430_vm0, %v839_v1 }
 0x22b   : > { %1037 = vmatpush.xpose.msk.msra.mxu3 %vm430_vm0, %v838_v4 }
 0x22f   : > { %1038 = vmatpush.xpose.msk.msra.mxu3 %vm430_vm0, %v837_v5 }
 0x233   : > { %1039 = vmatpush.xpose.msk.msra.mxu3 %vm430_vm0, %v836_v8 }
 0x237   : > { %1040 = vmatpush.xpose.msk.msra.mxu3 %vm430_vm0, %v835_v10 }
 0x23b   : > { %1041 = vmatpush.xpose.msk.msra.mxu3 %vm430_vm0, %v834_v12 }
 0x23f   : > { %1042 = vmatpush.xpose.msk.msra.mxu3 %vm430_vm0, %v833_v14 }
 0x243   : > { %1043 = vmatpush.xpose.msk.msra.mxu3 %vm430_vm0, %v832_v18 }
 0x247   : > { %1044 = vmatpush.xpose.msk.msra.mxu3 %vm430_vm0, %v831_v20 }
 0x24b   : > { %1045 = vmatpush.xpose.msk.msra.mxu3 %vm430_vm0, %v830_v22 }
 0x24f   : > { %1046 = vmatpush.xpose.msk.msra.mxu3 %vm430_vm0, %v829_v24 }
 0x253   : > { %1047 = vmatpush.xpose.msk.msra.mxu3 %vm430_vm0, %v828_v26 }
 0x257   : > { %1048 = vmatpush.xpose.msk.msra.mxu3 %vm430_vm0, %v827_v28 }
 0x25b   : > { %1049 = vmatpush.xpose.msk.msra.mxu3 %vm430_vm0, %v826_v29 }
 0x25e   : > { %1050 = vmatmul.msk.f32.vlgmr.msra.gmra.mxu3 %vm430_vm0, %v842_v30 }
 0x2e1   : > { %v917_v32 = vpop.f32.mrf.mxu3 }
 0x2e2   : > { %v918_v33 = vadd.f32 %v917_v32, %v847_v31 }
 0x2e4   : > { %920 = vst [vmem:[%s365_s24] sm:$0x7] %v918_v33 }
 0x2e5 PF: > { %s20_s13 = sadd.s32 1, %s1073_s13  }
 0x2e6   : > { %p17_p4 = scmp.ge.s32.totalorder %s20_s13, 4  }
 0x2e8   :  { %19 = sbr.rel (!%p17_p4) target bundleno = 1 (0x1), region = 93 }

</bundles_post_ra>
